<compile_context>
chip_gen: v5e
topology: v5e:2x2
jax: 0.10.0
libtpu: 0.0.40
codegen_flags: <defaults>
</compile_context>

<pallas_src>
import functools

import jax
import jax.numpy as jnp
from jax import lax
from jax.experimental import pallas as pl
from jax.experimental.pallas import tpu as pltpu


def _mha_kernel(x_ref, wqkv_ref, bqkv_ref, wo_ref, bo_ref, o_ref, *,
                heads, head_dim):
    """One batch per grid step.

    x_ref:    (1, S, E)   bf16 input tile
    wqkv_ref: (E, 3E)     bf16 fused Q|K|V projection (Q pre-scaled), resident
    bqkv_ref: (1, 3E)     f32 fused Q|K|V bias (Q part pre-scaled), resident
    wo_ref:   (H, D, E)   bf16 per-head slices of fc_out weight, resident
    bo_ref:   (1, E)      f32 fc_out bias, resident
    o_ref:    (1, S, E)   f32 output tile
    """
    S = x_ref.shape[1]
    D = head_dim
    E = heads * D

    xb = x_ref[0]                                                   # (S, E) bf16

    # Fused QKV projection for ALL heads: one lane-dense bf16 MXU pass (N = 3E).
    qkv = jnp.dot(xb, wqkv_ref[...],
                  preferred_element_type=jnp.float32) + bqkv_ref[...]   # (S, 3E) f32

    acc = jnp.zeros((S, E), jnp.float32)

    # Heads loop: static unroll (heads is a small Python constant).
    for h in range(heads):
        q = qkv[:, h * D:(h + 1) * D]            # (S, D), already 1/sqrt(E)-scaled
        k = qkv[:, E + h * D:E + (h + 1) * D]
        v = qkv[:, 2 * E + h * D:2 * E + (h + 1) * D]

        # energy = q @ k^T; operands kept in f32 for softmax fidelity.
        energy = lax.dot_general(q, k, (((1,), (1,)), ((), ())),
                                 preferred_element_type=jnp.float32)    # (S, S)
        energy = energy - jnp.max(energy, axis=-1, keepdims=True)
        p = jnp.exp(energy)                                              # (S, S) f32

        # Softmax denominator on the EUP; normalization deferred past PV
        # (scales (S, D) instead of the (S, S) probabilities).
        inv_l = pl.reciprocal(jnp.sum(p, axis=-1, keepdims=True), approx=True)

        head_out = jnp.dot(p.astype(jnp.bfloat16), v.astype(jnp.bfloat16),
                           preferred_element_type=jnp.float32)           # (S, D)
        head_out = head_out * inv_l

        # fc_out decomposed per head (lane-dense N = E): acc += o_h @ Wo_h.
        acc = acc + jnp.dot(head_out.astype(jnp.bfloat16), wo_ref[h],
                            preferred_element_type=jnp.float32)          # (S, E)

    o_ref[0] = (acc + bo_ref[...]).astype(o_ref.dtype)


def multi_head_attention(x, params, *, embed_size, heads):
    """x: (B, S, E) float32.  params: PyTorch-layout weights/biases."""
    B, S, E = x.shape
    assert E == embed_size and E % heads == 0
    D = E // heads
    scale = 1.0 / (float(embed_size) ** 0.5)

    # PyTorch nn.Linear stores W as (out, in); transpose to (in, out).
    # Fold the softmax temperature into the Q projection (weights + bias).
    wq = params["wq"].T * scale
    wk = params["wk"].T
    wv = params["wv"].T

    # Fused (E, 3E) QKV weight in bf16.  Output feature e of each projection
    # belongs to head e // D (matches the reference .view reshape), so head h
    # lives at columns [h*D:(h+1)*D] within each third.
    wqkv = jnp.concatenate([wq, wk, wv], axis=1).astype(jnp.bfloat16)      # (E, 3E)
    bqkv = jnp.concatenate(
        [params["bq"] * scale, params["bk"], params["bv"]]
    ).reshape(1, 3 * E).astype(jnp.float32)                                # (1, 3E)

    # fc_out: rows [h*D:(h+1)*D] of Wo^T act on head h's output.
    wo_h = params["wo"].T.reshape(heads, D, E).astype(jnp.bfloat16)        # (H, D, E)
    bo = params["bo"].reshape(1, E).astype(jnp.float32)

    # bf16 activations into the kernel (halves x DMA); accumulation stays f32.
    x_bf16 = x.astype(jnp.bfloat16)

    # Scoped-VMEM budget from the actual block footprint (default 16/32 MiB is
    # hit long before physical at moderate S, E); clamp to a v7x-safe ceiling.
    est = (2 * (S * E * 2 + S * E * 4)          # x (bf16) + out (f32), double-buffered
           + E * 3 * E * 2 + heads * D * E * 2  # bf16 weights
           + 3 * E * 4 + E * 4                  # biases
           + S * 3 * E * 4                      # qkv
           + 2 * S * S * 4                      # energy + p
           + 3 * S * E * 4)                     # acc + temporaries
    vmem_limit = int(min(max(2 * est, 32 * 1024 * 1024), 64 * 1024 * 1024))

    kernel = functools.partial(_mha_kernel, heads=heads, head_dim=D)

    return pl.pallas_call(
        kernel,
        out_shape=jax.ShapeDtypeStruct((B, S, E), jnp.float32),
        grid_spec=pltpu.PrefetchScalarGridSpec(
            num_scalar_prefetch=0,
            grid=(B,),
            in_specs=[
                pl.BlockSpec((1, S, E), lambda b: (b, 0, 0)),       # x
                pl.BlockSpec((E, 3 * E), lambda b: (0, 0)),         # wqkv (resident)
                pl.BlockSpec((1, 3 * E), lambda b: (0, 0)),         # bqkv (resident)
                pl.BlockSpec((heads, D, E), lambda b: (0, 0, 0)),   # wo   (resident)
                pl.BlockSpec((1, E), lambda b: (0, 0)),             # bo   (resident)
            ],
            out_specs=pl.BlockSpec((1, S, E), lambda b: (b, 0, 0)),
        ),
        compiler_params=pltpu.CompilerParams(
            dimension_semantics=("parallel",),
            vmem_limit_bytes=vmem_limit),
    )(x_bf16, wqkv, bqkv, wo_h, bo)


def _reference(x, params, *, embed_size, heads):
    """Pure-JAX f32 reference mirroring the PyTorch forward exactly."""
    B, S, E = x.shape
    D = E // heads
    q = x @ params["wq"].T + params["bq"]
    k = x @ params["wk"].T + params["bk"]
    v = x @ params["wv"].T + params["bv"]
    q = q.reshape(B, S, heads, D)
    k = k.reshape(B, S, heads, D)
    v = v.reshape(B, S, heads, D)
    energy = jnp.einsum("bqhd,bkhd->bhqk", q, k)
    attn = jax.nn.softmax(energy / (embed_size ** 0.5), axis=3)
    out = jnp.einsum("bhqk,bkhd->bqhd", attn, v).reshape(B, S, E)
    return out @ params["wo"].T + params["bo"]


if __name__ == "__main__":
    B, S = 2, 8
    embed_size, heads = 32, 4

    key = jax.random.PRNGKey(0)
    keys = jax.random.split(key, 9)
    init = 1.0 / (embed_size ** 0.5)
    params = {
        "wq": jax.random.uniform(keys[0], (embed_size, embed_size), jnp.float32, -init, init),
        "bq": jax.random.uniform(keys[1], (embed_size,), jnp.float32, -init, init),
        "wk": jax.random.uniform(keys[2], (embed_size, embed_size), jnp.float32, -init, init),
        "bk": jax.random.uniform(keys[3], (embed_size,), jnp.float32, -init, init),
        "wv": jax.random.uniform(keys[4], (embed_size, embed_size), jnp.float32, -init, init),
        "bv": jax.random.uniform(keys[5], (embed_size,), jnp.float32, -init, init),
        "wo": jax.random.uniform(keys[6], (embed_size, embed_size), jnp.float32, -init, init),
        "bo": jax.random.uniform(keys[7], (embed_size,), jnp.float32, -init, init),
    }
    x = jax.random.normal(keys[8], (B, S, embed_size), jnp.float32)

    out = multi_head_attention(x, params, embed_size=embed_size, heads=heads)
    out = jax.block_until_ready(out)

    ref = _reference(x, params, embed_size=embed_size, heads=heads)
    assert out.shape == (B, S, embed_size)
    # Tolerance deliberately relaxed vs. the f32 reference: matmul operands are
    # bf16 (per perf review); softmax statistics and accumulation remain f32.
    assert jnp.allclose(out, ref, atol=3e-2, rtol=3e-2), "mismatch vs reference"

    print("KERNEL_OK")
</pallas_src>

<mosaic_0001>
module attributes {stable_mosaic.version = 11 : i64} {
  func.func @_mha_kernel(%arg0: i32, %arg1: memref<1x8x32xbf16, #tpu.memory_space<vmem>>, %arg2: memref<32x96xbf16, #tpu.memory_space<vmem>>, %arg3: memref<1x96xf32, #tpu.memory_space<vmem>>, %arg4: memref<4x8x32xbf16, #tpu.memory_space<vmem>>, %arg5: memref<1x32xf32, #tpu.memory_space<vmem>>, %arg6: memref<1x8x32xf32, #tpu.memory_space<vmem>>) attributes {dimension_semantics = [#tpu.dimension_semantics<parallel>], iteration_bounds = array<i64: 2>, scalar_prefetch = 0 : i64, scratch_operands = 0 : i64, tpu.core_type = #tpu.core_type<tc>, window_params = [{transform_indices = @transform_0, window_bounds = array<i64: 1, 8, 32>}, {pipeline_mode = #tpu.pipeline_mode<synchronous>, transform_indices = @transform_1, window_bounds = array<i64: 32, 96>}, {pipeline_mode = #tpu.pipeline_mode<synchronous>, transform_indices = @transform_2, window_bounds = array<i64: 1, 96>}, {pipeline_mode = #tpu.pipeline_mode<synchronous>, transform_indices = @transform_3, window_bounds = array<i64: 4, 8, 32>}, {pipeline_mode = #tpu.pipeline_mode<synchronous>, transform_indices = @transform_4, window_bounds = array<i64: 1, 32>}, {transform_indices = @transform_5, window_bounds = array<i64: 1, 8, 32>}]} {
    %c0 = arith.constant 0 : index
    %c0_0 = arith.constant 0 : index
    %c0_1 = arith.constant 0 : index
    %0 = vector.load %arg1[%c0, %c0_0, %c0_1] : memref<1x8x32xbf16, #tpu.memory_space<vmem>>, vector<1x8x32xbf16>
    %1 = vector.shape_cast %0 : vector<1x8x32xbf16> to vector<8x32xbf16>
    %c0_2 = arith.constant 0 : index
    %c0_3 = arith.constant 0 : index
    %2 = vector.load %arg2[%c0_2, %c0_3] : memref<32x96xbf16, #tpu.memory_space<vmem>>, vector<32x96xbf16>
    %cst = arith.constant dense<0.000000e+00> : vector<8x96xf32>
    %3 = tpu.matmul %1, %2, %cst {dimension_numbers = #tpu.dot_dimension_numbers<[1], [0], [0], [1], [0, 0, 1, 1], [], []>} : vector<8x32xbf16>, vector<32x96xbf16>, vector<8x96xf32> -> vector<8x96xf32>
    %c0_4 = arith.constant 0 : index
    %c0_5 = arith.constant 0 : index
    %4 = vector.load %arg3[%c0_4, %c0_5] : memref<1x96xf32, #tpu.memory_space<vmem>>, vector<1x96xf32>
    %5 = vector.broadcast %4 : vector<1x96xf32> to vector<8x96xf32>
    %6 = arith.addf %3, %5 : vector<8x96xf32>
    %cst_6 = arith.constant 0.000000e+00 : f32
    %7 = vector.broadcast %cst_6 : f32 to vector<8x32xf32>
    %8 = vector.extract_strided_slice %6 {offsets = [0, 0], sizes = [8, 8], strides = [1, 1]} : vector<8x96xf32> to vector<8x8xf32>
    %9 = vector.extract_strided_slice %6 {offsets = [0, 32], sizes = [8, 8], strides = [1, 1]} : vector<8x96xf32> to vector<8x8xf32>
    %10 = vector.extract_strided_slice %6 {offsets = [0, 64], sizes = [8, 8], strides = [1, 1]} : vector<8x96xf32> to vector<8x8xf32>
    %cst_7 = arith.constant dense<0.000000e+00> : vector<8x8xf32>
    %11 = tpu.matmul %8, %9, %cst_7 {dimension_numbers = #tpu.dot_dimension_numbers<[1], [1], [0], [0], [0, 0, 1, 0], [], []>} : vector<8x8xf32>, vector<8x8xf32>, vector<8x8xf32> -> vector<8x8xf32>
    %cst_8 = arith.constant dense<0xFF800000> : vector<8xf32>
    %12 = vector.multi_reduction <maximumf>, %11, %cst_8 [1] : vector<8x8xf32> to vector<8xf32>
    %13 = vector.shape_cast %12 : vector<8xf32> to vector<8x1xf32>
    %14 = vector.broadcast %13 : vector<8x1xf32> to vector<8x8xf32>
    %15 = arith.subf %11, %14 : vector<8x8xf32>
    %16 = math.exp %15 : vector<8x8xf32>
    %cst_9 = arith.constant dense<0.000000e+00> : vector<8xf32>
    %17 = vector.multi_reduction <add>, %16, %cst_9 [1] : vector<8x8xf32> to vector<8xf32>
    %18 = vector.shape_cast %17 : vector<8xf32> to vector<8x1xf32>
    %19 = tpu.reciprocal %18 {approx = true} : vector<8x1xf32> -> vector<8x1xf32>
    %20 = arith.truncf %16 : vector<8x8xf32> to vector<8x8xbf16>
    %21 = arith.truncf %10 : vector<8x8xf32> to vector<8x8xbf16>
    %cst_10 = arith.constant dense<0.000000e+00> : vector<8x8xf32>
    %22 = tpu.matmul %20, %21, %cst_10 {dimension_numbers = #tpu.dot_dimension_numbers<[1], [0], [0], [1], [0, 0, 1, 1], [], []>} : vector<8x8xbf16>, vector<8x8xbf16>, vector<8x8xf32> -> vector<8x8xf32>
    %23 = vector.broadcast %19 : vector<8x1xf32> to vector<8x8xf32>
    %24 = arith.mulf %22, %23 : vector<8x8xf32>
    %25 = arith.truncf %24 : vector<8x8xf32> to vector<8x8xbf16>
    %c0_11 = arith.constant 0 : index
    %c0_12 = arith.constant 0 : index
    %c0_13 = arith.constant 0 : index
    %26 = vector.load %arg4[%c0_11, %c0_12, %c0_13] : memref<4x8x32xbf16, #tpu.memory_space<vmem>>, vector<1x8x32xbf16>
    %27 = vector.shape_cast %26 : vector<1x8x32xbf16> to vector<8x32xbf16>
    %cst_14 = arith.constant dense<0.000000e+00> : vector<8x32xf32>
    %28 = tpu.matmul %25, %27, %cst_14 {dimension_numbers = #tpu.dot_dimension_numbers<[1], [0], [0], [1], [0, 0, 1, 1], [], []>} : vector<8x8xbf16>, vector<8x32xbf16>, vector<8x32xf32> -> vector<8x32xf32>
    %29 = arith.addf %7, %28 : vector<8x32xf32>
    %30 = vector.extract_strided_slice %6 {offsets = [0, 8], sizes = [8, 8], strides = [1, 1]} : vector<8x96xf32> to vector<8x8xf32>
    %31 = vector.extract_strided_slice %6 {offsets = [0, 40], sizes = [8, 8], strides = [1, 1]} : vector<8x96xf32> to vector<8x8xf32>
    %32 = vector.extract_strided_slice %6 {offsets = [0, 72], sizes = [8, 8], strides = [1, 1]} : vector<8x96xf32> to vector<8x8xf32>
    %cst_15 = arith.constant dense<0.000000e+00> : vector<8x8xf32>
    %33 = tpu.matmul %30, %31, %cst_15 {dimension_numbers = #tpu.dot_dimension_numbers<[1], [1], [0], [0], [0, 0, 1, 0], [], []>} : vector<8x8xf32>, vector<8x8xf32>, vector<8x8xf32> -> vector<8x8xf32>
    %cst_16 = arith.constant dense<0xFF800000> : vector<8xf32>
    %34 = vector.multi_reduction <maximumf>, %33, %cst_16 [1] : vector<8x8xf32> to vector<8xf32>
    %35 = vector.shape_cast %34 : vector<8xf32> to vector<8x1xf32>
    %36 = vector.broadcast %35 : vector<8x1xf32> to vector<8x8xf32>
    %37 = arith.subf %33, %36 : vector<8x8xf32>
    %38 = math.exp %37 : vector<8x8xf32>
    %cst_17 = arith.constant dense<0.000000e+00> : vector<8xf32>
    %39 = vector.multi_reduction <add>, %38, %cst_17 [1] : vector<8x8xf32> to vector<8xf32>
    %40 = vector.shape_cast %39 : vector<8xf32> to vector<8x1xf32>
    %41 = tpu.reciprocal %40 {approx = true} : vector<8x1xf32> -> vector<8x1xf32>
    %42 = arith.truncf %38 : vector<8x8xf32> to vector<8x8xbf16>
    %43 = arith.truncf %32 : vector<8x8xf32> to vector<8x8xbf16>
    %cst_18 = arith.constant dense<0.000000e+00> : vector<8x8xf32>
    %44 = tpu.matmul %42, %43, %cst_18 {dimension_numbers = #tpu.dot_dimension_numbers<[1], [0], [0], [1], [0, 0, 1, 1], [], []>} : vector<8x8xbf16>, vector<8x8xbf16>, vector<8x8xf32> -> vector<8x8xf32>
    %45 = vector.broadcast %41 : vector<8x1xf32> to vector<8x8xf32>
    %46 = arith.mulf %44, %45 : vector<8x8xf32>
    %47 = arith.truncf %46 : vector<8x8xf32> to vector<8x8xbf16>
    %c1 = arith.constant 1 : index
    %c0_19 = arith.constant 0 : index
    %c0_20 = arith.constant 0 : index
    %48 = vector.load %arg4[%c1, %c0_19, %c0_20] : memref<4x8x32xbf16, #tpu.memory_space<vmem>>, vector<1x8x32xbf16>
    %49 = vector.shape_cast %48 : vector<1x8x32xbf16> to vector<8x32xbf16>
    %cst_21 = arith.constant dense<0.000000e+00> : vector<8x32xf32>
    %50 = tpu.matmul %47, %49, %cst_21 {dimension_numbers = #tpu.dot_dimension_numbers<[1], [0], [0], [1], [0, 0, 1, 1], [], []>} : vector<8x8xbf16>, vector<8x32xbf16>, vector<8x32xf32> -> vector<8x32xf32>
    %51 = arith.addf %29, %50 : vector<8x32xf32>
    %52 = vector.extract_strided_slice %6 {offsets = [0, 16], sizes = [8, 8], strides = [1, 1]} : vector<8x96xf32> to vector<8x8xf32>
    %53 = vector.extract_strided_slice %6 {offsets = [0, 48], sizes = [8, 8], strides = [1, 1]} : vector<8x96xf32> to vector<8x8xf32>
    %54 = vector.extract_strided_slice %6 {offsets = [0, 80], sizes = [8, 8], strides = [1, 1]} : vector<8x96xf32> to vector<8x8xf32>
    %cst_22 = arith.constant dense<0.000000e+00> : vector<8x8xf32>
    %55 = tpu.matmul %52, %53, %cst_22 {dimension_numbers = #tpu.dot_dimension_numbers<[1], [1], [0], [0], [0, 0, 1, 0], [], []>} : vector<8x8xf32>, vector<8x8xf32>, vector<8x8xf32> -> vector<8x8xf32>
    %cst_23 = arith.constant dense<0xFF800000> : vector<8xf32>
    %56 = vector.multi_reduction <maximumf>, %55, %cst_23 [1] : vector<8x8xf32> to vector<8xf32>
    %57 = vector.shape_cast %56 : vector<8xf32> to vector<8x1xf32>
    %58 = vector.broadcast %57 : vector<8x1xf32> to vector<8x8xf32>
    %59 = arith.subf %55, %58 : vector<8x8xf32>
    %60 = math.exp %59 : vector<8x8xf32>
    %cst_24 = arith.constant dense<0.000000e+00> : vector<8xf32>
    %61 = vector.multi_reduction <add>, %60, %cst_24 [1] : vector<8x8xf32> to vector<8xf32>
    %62 = vector.shape_cast %61 : vector<8xf32> to vector<8x1xf32>
    %63 = tpu.reciprocal %62 {approx = true} : vector<8x1xf32> -> vector<8x1xf32>
    %64 = arith.truncf %60 : vector<8x8xf32> to vector<8x8xbf16>
    %65 = arith.truncf %54 : vector<8x8xf32> to vector<8x8xbf16>
    %cst_25 = arith.constant dense<0.000000e+00> : vector<8x8xf32>
    %66 = tpu.matmul %64, %65, %cst_25 {dimension_numbers = #tpu.dot_dimension_numbers<[1], [0], [0], [1], [0, 0, 1, 1], [], []>} : vector<8x8xbf16>, vector<8x8xbf16>, vector<8x8xf32> -> vector<8x8xf32>
    %67 = vector.broadcast %63 : vector<8x1xf32> to vector<8x8xf32>
    %68 = arith.mulf %66, %67 : vector<8x8xf32>
    %69 = arith.truncf %68 : vector<8x8xf32> to vector<8x8xbf16>
    %c2 = arith.constant 2 : index
    %c0_26 = arith.constant 0 : index
    %c0_27 = arith.constant 0 : index
    %70 = vector.load %arg4[%c2, %c0_26, %c0_27] : memref<4x8x32xbf16, #tpu.memory_space<vmem>>, vector<1x8x32xbf16>
    %71 = vector.shape_cast %70 : vector<1x8x32xbf16> to vector<8x32xbf16>
    %cst_28 = arith.constant dense<0.000000e+00> : vector<8x32xf32>
    %72 = tpu.matmul %69, %71, %cst_28 {dimension_numbers = #tpu.dot_dimension_numbers<[1], [0], [0], [1], [0, 0, 1, 1], [], []>} : vector<8x8xbf16>, vector<8x32xbf16>, vector<8x32xf32> -> vector<8x32xf32>
    %73 = arith.addf %51, %72 : vector<8x32xf32>
    %74 = vector.extract_strided_slice %6 {offsets = [0, 24], sizes = [8, 8], strides = [1, 1]} : vector<8x96xf32> to vector<8x8xf32>
    %75 = vector.extract_strided_slice %6 {offsets = [0, 56], sizes = [8, 8], strides = [1, 1]} : vector<8x96xf32> to vector<8x8xf32>
    %76 = vector.extract_strided_slice %6 {offsets = [0, 88], sizes = [8, 8], strides = [1, 1]} : vector<8x96xf32> to vector<8x8xf32>
    %cst_29 = arith.constant dense<0.000000e+00> : vector<8x8xf32>
    %77 = tpu.matmul %74, %75, %cst_29 {dimension_numbers = #tpu.dot_dimension_numbers<[1], [1], [0], [0], [0, 0, 1, 0], [], []>} : vector<8x8xf32>, vector<8x8xf32>, vector<8x8xf32> -> vector<8x8xf32>
    %cst_30 = arith.constant dense<0xFF800000> : vector<8xf32>
    %78 = vector.multi_reduction <maximumf>, %77, %cst_30 [1] : vector<8x8xf32> to vector<8xf32>
    %79 = vector.shape_cast %78 : vector<8xf32> to vector<8x1xf32>
    %80 = vector.broadcast %79 : vector<8x1xf32> to vector<8x8xf32>
    %81 = arith.subf %77, %80 : vector<8x8xf32>
    %82 = math.exp %81 : vector<8x8xf32>
    %cst_31 = arith.constant dense<0.000000e+00> : vector<8xf32>
    %83 = vector.multi_reduction <add>, %82, %cst_31 [1] : vector<8x8xf32> to vector<8xf32>
    %84 = vector.shape_cast %83 : vector<8xf32> to vector<8x1xf32>
    %85 = tpu.reciprocal %84 {approx = true} : vector<8x1xf32> -> vector<8x1xf32>
    %86 = arith.truncf %82 : vector<8x8xf32> to vector<8x8xbf16>
    %87 = arith.truncf %76 : vector<8x8xf32> to vector<8x8xbf16>
    %cst_32 = arith.constant dense<0.000000e+00> : vector<8x8xf32>
    %88 = tpu.matmul %86, %87, %cst_32 {dimension_numbers = #tpu.dot_dimension_numbers<[1], [0], [0], [1], [0, 0, 1, 1], [], []>} : vector<8x8xbf16>, vector<8x8xbf16>, vector<8x8xf32> -> vector<8x8xf32>
    %89 = vector.broadcast %85 : vector<8x1xf32> to vector<8x8xf32>
    %90 = arith.mulf %88, %89 : vector<8x8xf32>
    %91 = arith.truncf %90 : vector<8x8xf32> to vector<8x8xbf16>
    %c3 = arith.constant 3 : index
    %c0_33 = arith.constant 0 : index
    %c0_34 = arith.constant 0 : index
    %92 = vector.load %arg4[%c3, %c0_33, %c0_34] : memref<4x8x32xbf16, #tpu.memory_space<vmem>>, vector<1x8x32xbf16>
    %93 = vector.shape_cast %92 : vector<1x8x32xbf16> to vector<8x32xbf16>
    %cst_35 = arith.constant dense<0.000000e+00> : vector<8x32xf32>
    %94 = tpu.matmul %91, %93, %cst_35 {dimension_numbers = #tpu.dot_dimension_numbers<[1], [0], [0], [1], [0, 0, 1, 1], [], []>} : vector<8x8xbf16>, vector<8x32xbf16>, vector<8x32xf32> -> vector<8x32xf32>
    %95 = arith.addf %73, %94 : vector<8x32xf32>
    %c0_36 = arith.constant 0 : index
    %c0_37 = arith.constant 0 : index
    %96 = vector.load %arg5[%c0_36, %c0_37] : memref<1x32xf32, #tpu.memory_space<vmem>>, vector<1x32xf32>
    %97 = vector.broadcast %96 : vector<1x32xf32> to vector<8x32xf32>
    %98 = arith.addf %95, %97 : vector<8x32xf32>
    %c0_38 = arith.constant 0 : index
    %c0_39 = arith.constant 0 : index
    %c0_40 = arith.constant 0 : index
    %99 = vector.load %arg6[%c0_38, %c0_39, %c0_40] : memref<1x8x32xf32, #tpu.memory_space<vmem>>, vector<1x8x32xf32>
    %100 = vector.shape_cast %99 : vector<1x8x32xf32> to vector<8x32xf32>
    %101 = vector.shape_cast %98 : vector<8x32xf32> to vector<1x8x32xf32>
    tpu.vector_store %arg6[%c0_38, %c0_39, %c0_40], %101 {strides = array<i32>} : memref<1x8x32xf32, #tpu.memory_space<vmem>>, vector<1x8x32xf32>,
    return
  }
  func.func @transform_0(%arg0: i32) -> (i32, i32, i32) {
    %c0_i32 = arith.constant 0 : i32
    %c0_i32_0 = arith.constant 0 : i32
    %c0_i32_1 = arith.constant 0 : i32
    return %arg0, %c0_i32, %c0_i32_0 : i32, i32, i32
  }
  func.func @transform_1(%arg0: i32) -> (i32, i32) {
    %c0_i32 = arith.constant 0 : i32
    %c0_i32_0 = arith.constant 0 : i32
    %c0_i32_1 = arith.constant 0 : i32
    return %c0_i32, %c0_i32_0 : i32, i32
  }
  func.func @transform_2(%arg0: i32) -> (i32, i32) {
    %c0_i32 = arith.constant 0 : i32
    %c0_i32_0 = arith.constant 0 : i32
    %c0_i32_1 = arith.constant 0 : i32
    return %c0_i32, %c0_i32_0 : i32, i32
  }
  func.func @transform_3(%arg0: i32) -> (i32, i32, i32) {
    %c0_i32 = arith.constant 0 : i32
    %c0_i32_0 = arith.constant 0 : i32
    %c0_i32_1 = arith.constant 0 : i32
    %c0_i32_2 = arith.constant 0 : i32
    return %c0_i32, %c0_i32_0, %c0_i32_1 : i32, i32, i32
  }
  func.func @transform_4(%arg0: i32) -> (i32, i32) {
    %c0_i32 = arith.constant 0 : i32
    %c0_i32_0 = arith.constant 0 : i32
    %c0_i32_1 = arith.constant 0 : i32
    return %c0_i32, %c0_i32_0 : i32, i32
  }
  func.func @transform_5(%arg0: i32) -> (i32, i32, i32) {
    %c0_i32 = arith.constant 0 : i32
    %c0_i32_0 = arith.constant 0 : i32
    %c0_i32_1 = arith.constant 0 : i32
    return %arg0, %c0_i32, %c0_i32_0 : i32, i32, i32
  }
}

</mosaic_0001>

<bundles_post_ra>
// kernel: tpu_custom_call.1
= control target key start
LH: loop header
LB: loop body
LE: loop exit
PB: predicated region body
PF: predicated region fallthrough
CT: control target
= control target key end

     0   :  { %10 = vsyncpa [#allocation3], 0  ;;  %s1301_s0 = inlined_call_operand.hbm [shape: bf16[2,8,32], index: 0, kind: input, shape index: {}]   ;;  %s1302_s1 = inlined_call_operand.hbm [shape: bf16[32,96], index: 1, kind: input, shape index: {}]   ;;  %s1303_s2 = inlined_call_operand.vmem [shape: f32[1,96], index: 2, kind: input, shape index: {}]   ;;  %s1304_s3 = inlined_call_operand.hbm [shape: bf16[4,8,32], index: 3, kind: input, shape index: {}]   ;;  %s1305_s4 = inlined_call_operand.vmem [shape: f32[1,32], index: 4, kind: input, shape index: {}]   ;;  %s1306_s5 = inlined_call_operand.hbm [shape: f32[2,8,32], index: 5, kind: output, shape index: {}]  }
   0x1   :  { %12 = vsyncpa [#allocation3 + $0x1], 0 }
   0x2   :  { %13 = vsyncpa [#allocation6], 0 }
   0x3   :  { %14 = vsyncpa [#allocation4], 0 }
   0x4   :  { %16 = vsyncpa [#allocation4 + $0x1], 0  ;;  %s1109_s18 = smov 0   ;;  %s1111_s19 = smov 0  }
   0x5   :  { %s1113_s20 = smov 0   ;;  %s1115_s21 = smov 0  }
   0x6 LB: > { %s174_s24 = sshll.u32 %s1302_s1, 4  ;;  %s1133_s25 = sadd.s32 4294967295, %s1062_s21   ;;  %s1062_s21 = sphi %s1115_s21, %s1317_s21   ;;  %s1058_s20 = sphi %s1113_s20, %s1316_s20   ;;  %s1054_s19 = sphi %s1111_s19, %s1315_s19   ;;  %s1050_s18 = sphi %s1109_s18, %s1314_s18   ;;  %s175_s24 = int_to_ptr.hbm [resolvable:$true] %s174_s24 }
   0x7   : > { %p762_p0 = scmp.ge.s32.totalorder %s1062_s21, 1  ;;  %p43_p1 = scmp.eq.s32.totalorder %s1133_s25, 0 }
   0x8   : > { %p163_p2 = scmp.lt.s32.totalorder %s1062_s21, 3  ;;  %s1064_s27 = smov [#allocation5]  }
   0x9   : > { %s176_s28 = sshll.u32 %s1064_s27, 4  ;;  %s191_s6 = sshll.u32 %s1304_s3, 4  ;;  %s177_s28 = int_to_ptr.vmem [resolvable:$true] %s176_s28  ;;  %s192_s6 = int_to_ptr.hbm [resolvable:$true] %s191_s6 }
   0xa   : > { %p1138_p3 = pnand %p762_p0, %p163_p2  ;;  %s1065_s7 = smov [#allocation7]  }
   0xb   : > { %s193_s8 = sshll.u32 %s1065_s7, 4  ;;  %s1066_s9 = smov 64   ;;  %s194_s8 = int_to_ptr.vmem [resolvable:$true] %s193_s8 }
   0xc   : > { %p816_p4 = pneg %p1138_p3  ;;  %s1067_s10 = smov 4  }
   0xd   : > { %s761_s11 = sadd.s32 4294967294, %s1062_s21   ;;  %s1152_s12 = sadd.s32 1, %s1062_s21  }
   0xe   : > { %p817_p6 = pnand %p816_p4, %p43_p1  ;;  %s26_s13 = ssub.s32 %s1062_s21, %s1152_s12 }
   0xf   : > { %s29_s14 = sadd.s32 1, %s1058_s20  ;;  %p27_p7 = scmp.eq.s32.totalorder %s26_s13, 0 }
  0x10   : > { %819 = dma.hbm_to_vmem [thread:$0]  (!%p817_p6), %s175_s24, 256, %s177_s28, [#allocation6], %s1066_s9, %s1066_s9, %s1067_s10  }
  0x11   : > { %822 = dma.hbm_to_vmem [thread:$0]  (!%p817_p6), %s192_s6, 256, %s194_s8, [#allocation6], %s1066_s9, %s1066_s9, %s1067_s10  }
  0x12   : > { %p36_p8 = scmp.ne.s32.totalorder %s1058_s20, %s1054_s19  ;;  %p37_p9 = scmp.eq.s32.totalorder %s1062_s21, 0 }
  0x13   : > { %p42_p10 = scmp.ne.s32.totalorder %s1054_s19, %s1050_s18  ;;  %p150_p13 = scmp.eq.s32.totalorder %s1133_s25, 1 }
  0x14   : > { %s1163_s15 = scalar_select %p27_p7, %s1058_s20, %s29_s14  }
  0x15   : > { %p1165_p11 = por %p37_p9, %p36_p8  ;;  %p1171_p12 = por %p43_p1, %p42_p10 }
  0x16   : > { %p156_p0 = scmp.eq.s32.totalorder %s761_s11, 1  ;;  %p833_p2 = scmp.lt.s32.totalorder %s1062_s21, 2 }
  0x17   : > { %s210_s22 = sand.u32 1, %s1058_s20   ;;  %p1178_p4 = por %p150_p13, %p36_p8 }
  0x18   : > { %p1182_p6 = por %p156_p0, %p42_p10  ;;  %s766_s27 = sshll.u32 %s210_s22, 2 }
  0x19   : > { %s767_s28 = sshll.u32 %s1062_s21, 2  ;;  %s214_s7 = scalar_lea.vmem [#allocation2], %s766_s27 }
  0x1a   : > { %s218_s6 = scalar_lea.hbm %s1301_s0, %s767_s28  ;;  %s222_s8 = sshll.u32 %s214_s7, 4  ;;  %s223_s8 = int_to_ptr.vmem [resolvable:$true] %s222_s8 }
  0x1b   : > { %s220_s9 = sshll.u32 %s218_s6, 4  ;;  %p1192_p7 = pnand %p833_p2, %p1165_p11  ;;  %s221_s9 = int_to_ptr.hbm [resolvable:$true] %s220_s9 }
  0x1c   : > { %s211_s11 = scalar_lea.sflag [#allocation3], %s210_s22  ;;  %s962_s13 = sshra.s32 %s221_s9, 4  ;;  %s963_s13 = int_to_ptr.hbm [resolvable:$true] %s962_s13 }
  0x1d   : > { %s964_s14 = scalar_lea.hbm %s963_s13, 4  ;;  %p966_p9 = pneg %p1192_p7 }
  0x1e   : > { %p965_p8 = scmp.ne.s32.totalorder %s963_s13, %s964_s14  ;;  %s969_s29 = scalar_lea.hbm %s1301_s0, 8 }
  0x1f   : > { %p970_p11 = scmp.lt.s32.totalorder %s963_s13, %s1301_s0  ;;  %p971_p0 = scmp.lt.s32.totalorder %s969_s29, %s964_s14 }
  0x20   : > { %p967_p10 = pnand %p966_p9, %p965_p8 }
  0x21   : > { %p972_p2 = por %p971_p0, %p970_p11 }
  0x22   : > { %p968_p13 = pneg %p967_p10 }
  0x24   : > { %p973_p5 = pnand %p972_p2, %p968_p13 }
  0x26   : > { %976 = shalt.err (!%p973_p5)
}
  0x27   : > { %826 = dma.hbm_to_vmem [thread:$0]  (!%p1192_p7), %s221_s9, 64, %s223_s8, %s211_s11  }
  0x28   : > { %231 = sbr.rel (%p1138_p3) target bundleno = 1126 (0x466), region = 40  ;;  %s1209_s22 = sand.u32 (!%p1138_p3), 1, %s1054_s19  }
  0x29   : > { %s769_s6 = sshll.u32 (!%p1138_p3), %s1209_s22, 2  ;;  %s234_s7 = scalar_lea.sflag (!%p1138_p3), [#allocation3], %s1209_s22 }
  0x2a   : > { %s237_s27 = scalar_lea.vmem (!%p1138_p3), [#allocation2], %s769_s6 }
  0x2d   : > { %1037 = dma.done.wait (%p1171_p12), %s234_s7, 64  }
  0x2e   : > { %1039 = vsyncadd (%p1171_p12), %s234_s7, 4294967232 }
  0x2f   : > { %1041 = dma.done.wait (%p43_p1), [#allocation6], 512  }
  0x30   : > { %1043 = vsyncadd (%p43_p1), [#allocation6], 4294966784  ;;  %v803_v0 = vld [vmem:[#allocation5 + $0x8] sm:$0xff]  ;;  %v802_v1 = vld [vmem:[#allocation5] sm:$0xff]  ;;  %vm297_vm0 = vcmask 261120   ;;  %s1068_s17 = smov 96  }
  0x31   : > { %307 = vmatpush.bf16.msra.mxu0 %v803_v0  ;;  %v276_v2 = vld [vmem:[%s237_s27] sm:$0xf]  ;;  %s1069_s9 = smov 88   ;;  %s1070_s10 = smov 56   ;;  %vm317_vm1 = vcmask 64512   ;;  %vm360_vm2 = vcmask 1043456  }
  0x32   : > { %v884_v3 = vld [vmem:[%s1303_s2] ss:$0 sm:$0xff]  ;;  %s1071_s11 = smov 120   ;;  %s1072_s13 = smov 80   ;;  %v379_v44 = vld [vmem:[#allocation7] sm:$0xf] }
  0x33   : > { %s1073_s14 = smov 72   ;;  %s1074_s28 = smov 112   ;;  %v467_v45 = vsel %vm360_vm2, %v379_v44, 0  ;;  %v443_v46 = vld [vmem:[#allocation7 + $0x4] sm:$0xf] }
  0x34   : > { %s1075_s29 = smov 104   ;;  %s1076_s30 = smov 64   ;;  %v448_v47 = vsel %vm360_vm2, %v443_v46, 0 }
  0x35   : > { %308 = vmatpush.bf16.msra.mxu0 %v802_v1  ;;  %s1077_s16 = smov 48   ;;  %s1078_s6 = smov 40  }
  0x36   : > { %s772_s7 = sshll.u32 %s1209_s22, 3  ;;  %s799_s27 = sshll.u32 %s1133_s25, 3 }
  0x37   : > { %s657_s25 = scalar_lea.sflag [#allocation4], %s1209_s22 }
  0x38   : > { %781 = vmatmul.msk.bf16.vlgmr.msra.gmra.mxu0 %vm297_vm0, %v276_v2 }
  0xb5   : > { %v310_v4 = vpop.f32.mrf.mxu0 }
  0xb6   : > { %v311_v5 = vadd.f32 %v884_v3, %v310_v4 }
  0xb8   : > { %315 = vrot.lane.b32.xlu1 %v311_v5, %s1068_s17  ;;  %382 = vrot.lane.b32.xlu0 %v311_v5, %s1069_s9  ;;  %v1225_v6 = vpack.c.bf16 %v311_v5, %v311_v5  ;;  %s667_s17 = scalar_lea.hbm %s1306_s5, %s799_s27 }
  0xba   : > { %419 = vrot.lane.b32.xlu2 %v1225_v6, %s1070_s10 }
  0xbd   : > { %v312_v7 = vpop.f32.mrf.mxu0 }
  0xc0   : > { %380 = vrot.lane.b32.xlu0 %v311_v5, %s1071_s11  ;;  %s274_s11 = scalar_lea.vmem [#allocation8], %s772_s7 }
  0xc2   : > { %484 = vrot.lane.b32.xlu2 %v311_v5, %s1072_s13  ;;  %s669_s13 = sshll.u32 %s274_s11, 4  ;;  %s670_s13 = int_to_ptr.vmem [resolvable:$true] %s669_s13 }
  0xc8   : > { %568 = vrot.lane.b32.xlu0 %v311_v5, %s1073_s14  ;;  %s671_s14 = sshll.u32 %s667_s17, 4  ;;  %s672_s14 = int_to_ptr.hbm [resolvable:$true] %s671_s14 }
  0xca   : > { %482 = vrot.lane.b32.xlu2 %v311_v5, %s1074_s28  ;;  %s1006_s28 = sshra.s32 %s672_s14, 4  ;;  %s1007_s28 = int_to_ptr.hbm [resolvable:$true] %s1006_s28 }
  0xcb   : > { %p1013_p12 = scmp.lt.s32.totalorder %s1007_s28, %s1306_s5 }
  0xd0   : > { %566 = vrot.lane.b32.xlu0 %v311_v5, %s1075_s29  ;;  %s1008_s29 = scalar_lea.hbm %s1007_s28, 8 }
  0xd1   : > { %p1009_p1 = scmp.ne.s32.totalorder %s1007_s28, %s1008_s29 }
  0xd3   : > { %p1010_p3 = pnand %p1009_p1, %p1178_p4 }
  0xd5   : > { %p1011_p5 = pneg %p1010_p3 }
  0xd8   : > { %355 = vrot.lane.b32.xlu0 %v1225_v6, %s1076_s30 }
 0x114   : > { %v420_v8 = vpop.permute.xlu2 %419 }
 0x115   : > { %v425_v11 = vsel %vm360_vm2, %v420_v8, 0 }
 0x11c   : > { %v485_v12 = vpop.permute.xlu2 %484 }
 0x124   : > { %v483_v24 = vpop.permute.xlu2 %482 }
 0x12a   : > { %v316_v9 = vpop.permute.xlu1 %315  ;;  %v383_v10 = vpop.permute.xlu0 %382 }
 0x12b   : > { %782 = vmatpush.xpose.msk.msra.mxu1 %vm317_vm1, %v316_v9  ;;  %785 = vmatpush.xpose.msk.msra.mxu3 %vm317_vm1, %v383_v10 }
 0x12e   : > { %783 = vmatmul.msk.f32.vlgmr.msra.gmra.mxu1 %vm317_vm1, %v311_v5 }
 0x12f   : > { %434 = vmatpush.bf16.msrb.mxu1 %v425_v11  ;;  %457 = vmatpush.bf16.msrb.mxu3 %v448_v47 }
 0x132   : > { %v381_v13 = vpop.permute.xlu0 %380 }
 0x133   : > { %790 = vmatpush.xpose.msk.msra.mxu1 %vm317_vm1, %v485_v12  ;;  %786 = vmatmul.msk.f32.vlgmr.msra.gmra.mxu3 %vm317_vm1, %v381_v13  ;;  %v545_v12 = vld [vmem:[#allocation7 + $0x8] sm:$0xf] }
 0x134   : > { %v550_v13 = vsel %vm360_vm2, %v545_v12, 0 }
 0x135   : > { %559 = vmatpush.bf16.msra.mxu3 %v550_v13 }
 0x13a   : > { %v569_v14 = vpop.permute.xlu0 %568 }
 0x13b   : > { %794 = vmatpush.xpose.msk.msrb.mxu0 %vm317_vm1, %v569_v14  ;;  %v629_v14 = vld [vmem:[#allocation7 + $0xc] sm:$0xf] }
 0x142   : > { %v567_v15 = vpop.permute.xlu0 %566 }
 0x143   : > { %795 = vmatmul.msk.f32.vlgmr.msrb.gmra.mxu0 %vm317_vm1, %v567_v15 }
 0x14a   : > { %v356_v16 = vpop.permute.xlu0 %355 }
 0x14b   : > { %v362_v17 = vsel %vm360_vm2, %v356_v16, 0  ;;  %v634_v16 = vsel %vm360_vm2, %v629_v14, 0 }
 0x14c   : > { %371 = vmatpush.bf16.msra.mxu2 %v362_v17  ;;  %643 = vmatpush.bf16.msra.mxu0 %v634_v16 }
 0x150   : > { %476 = vmatpush.bf16.msrb.mxu2 %v467_v45 }
 0x1ab   : > { %v339_v18 = vpop.f32.mrf.mxu1 }
 0x1ac   : > { %v342_v19 = vsel %vm317_vm1, %v339_v18, -inf }
 0x1ad   : > { %343 = vmax.xlane.f32.xlu2 %v342_v19 }
 0x1b6   : > { %v405_v20 = vpop.f32.mrf.mxu3 }
 0x1b7   : > { %v408_v21 = vsel %vm317_vm1, %v405_v20, -inf }
 0x1b8   : > { %409 = vmax.xlane.f32.xlu1 %v408_v21 }
 0x1c0   : > { %v591_v22 = vpop.f32.mrf.mxu0 }
 0x1c1   : > { %v594_v23 = vsel %vm317_vm1, %v591_v22, -inf }
 0x1c2   : > { %595 = vmax.xlane.f32.xlu1 %v594_v23 }
 0x1c5   : > { %521 = vrot.lane.b32.xlu2 %v1225_v6, %s1077_s16 }
 0x220   : > { %v344_v25 = vpop.xlane.xlu2 %343 }
 0x221   : > { %v345_v26 = vsub.f32 %v339_v18, %v344_v25 }
 0x223   : > { %v346_v27 = vmul.f32 1.442695, %v345_v26 }
 0x225   : > { %886 = vpow2.f32 %v346_v27 }
 0x228   : > { %v522_v36 = vpop.permute.xlu2 %521 }
 0x229   : > { %v527_v41 = vsel %vm360_vm2, %v522_v36, 0 }
 0x22b   : > { %v887_v28 = vpop.eup %886  ;;  %v410_v29 = vpop.xlane.xlu1 %409 }
 0x22c   : > { %v411_v30 = vsub.f32 %v405_v20, %v410_v29  ;;  %v348_v31 = vsel %vm317_vm1, %v887_v28, 0.0  ;;  %v352_v32 = vpack.c.bf16 %v887_v28, %v887_v28 }
 0x22d   : > { %349 = vadd.xlane.f32.xlu0 %v348_v31  ;;  %v885_v31 = vld [vmem:[%s1305_s4] ss:$0 sm:$0xff] }
 0x22e   : > { %v412_v33 = vmul.f32 1.442695, %v411_v30  ;;  %784 = vmatmul.msk.bf16.vlgmr.msra.gmra.mxu2 %vm317_vm1, %v352_v32 }
 0x230   : > { %888 = vpow2.f32 %v412_v33 }
 0x235   : > { %v596_v34 = vpop.xlane.xlu1 %595 }
 0x236   : > { %v889_v35 = vpop.eup %888  ;;  %v597_v37 = vsub.f32 %v591_v22, %v596_v34 }
 0x237   : > { %v414_v38 = vsel %vm317_vm1, %v889_v35, 0.0  ;;  %v418_v39 = vpack.c.bf16 %v889_v35, %v889_v35 }
 0x238   : > { %v598_v40 = vmul.f32 1.442695, %v597_v37  ;;  %415 = vadd.xlane.f32.xlu0 %v414_v38 }
 0x239   : > { %787 = vmatmul.msk.bf16.vlgmr.msrb.gmra.mxu1 %vm317_vm1, %v418_v39 }
 0x23a   : > { %890 = vpow2.f32 %v598_v40  ;;  %536 = vmatpush.bf16.msrb.mxu1 %v527_v41 }
 0x240   : > { %v891_v42 = vpop.eup %890 }
 0x241   : > { %v600_v43 = vsel %vm317_vm1, %v891_v42, 0.0 }
 0x242   : > { %601 = vadd.xlane.f32.xlu0 %v600_v43 }
 0x249   : > { %791 = vmatmul.msk.f32.vlgmr.msra.gmra.mxu1 %vm317_vm1, %v483_v24 }
 0x2a0   : > { %v350_v48 = vpop.xlane.xlu0 %349 }
 0x2a1   : > { %892 = vrcp.f32 %v350_v48 }
 0x2a7   : > { %v893_v50 = vpop.eup %892 }
 0x2ab   : > { %v416_v49 = vpop.xlane.xlu0 %415 }
 0x2ac   : > { %894 = vrcp.f32 %v416_v49 }
 0x2b1   : > { %v373_v51 = vpop.f32.mrf.mxu2 }
 0x2b2   : > { %v377_v52 = vmul.f32 %v893_v50, %v373_v51  ;;  %v895_v54 = vpop.eup %894 }
 0x2b4   : > { %v378_v53 = vpack.c.bf16 %v377_v52, %v377_v52 }
 0x2b5   : > { %v602_v22 = vpop.xlane.xlu0 %601 }
 0x2b6   : > { %v436_v55 = vpop.f32.mrf.mxu1  ;;  %789 = vmatmul.msk.bf16.vlgmr.msrb.gmra.mxu2 %vm317_vm1, %v378_v53 }
 0x2b7   : > { %v440_v56 = vmul.f32 %v895_v54, %v436_v55 }
 0x2b9   : > { %v441_v57 = vpack.c.bf16 %v440_v56, %v440_v56  ;;  %v375_v58 = vpop.f32.mrf.mxu2 }
 0x2bb   : > { %788 = vmatmul.msk.bf16.vlgmr.msrb.gmra.mxu3 %vm317_vm1, %v441_v57 }
 0x2be   : > { %v438_v59 = vpop.f32.mrf.mxu1 }
 0x2c6   : > { %v507_v60 = vpop.f32.mrf.mxu1 }
 0x2c7   : > { %v510_v61 = vsel %vm317_vm1, %v507_v60, -inf }
 0x2c8   : > { %511 = vmax.xlane.f32.xlu1 %v510_v61 }
 0x2e1   : > { %605 = vrot.lane.b32.xlu1 %v1225_v6, %s1078_s6  ;;  %v604_v6 = vpack.c.bf16 %v891_v42, %v891_v42  ;;  %s1012_s6 = scalar_lea.hbm %s1306_s5, 16 }
 0x2e2   : > { %p1014_p7 = scmp.lt.s32.totalorder %s1012_s6, %s1008_s29 }
 0x2e4   : > { %p1015_p8 = por %p1014_p7, %p1013_p12 }
 0x2e6   : > { %p1016_p9 = pnand %p1015_p8, %p1011_p5 }
 0x339   : > { %v478_v62 = vpop.f32.mrf.mxu2 }
 0x33b   : > { %v512_v63 = vpop.xlane.xlu1 %511 }
 0x33c   : > { %v513_v0 = vsub.f32 %v507_v60, %v512_v63 }
 0x33e   : > { %v514_v1 = vmul.f32 1.442695, %v513_v0  ;;  %v459_v2 = vpop.f32.mrf.mxu3 }
 0x33f   : > { %v479_v3 = vadd.f32 %v478_v62, %v459_v2 }
 0x340   : > { %896 = vpow2.f32 %v514_v1 }
 0x341   : > { %v480_v4 = vpop.f32.mrf.mxu2 }
 0x346   : > { %v897_v5 = vpop.eup %896  ;;  %v461_v7 = vpop.f32.mrf.mxu3 }
 0x347   : > { %v520_v8 = vpack.c.bf16 %v897_v5, %v897_v5  ;;  %v516_v9 = vsel %vm317_vm1, %v897_v5, 0.0 }
 0x348   : > { %517 = vadd.xlane.f32.xlu2 %v516_v9 }
 0x349   : > { %792 = vmatmul.msk.bf16.vlgmr.msrb.gmra.mxu1 %vm317_vm1, %v520_v8 }
 0x353   : > { %v606_v10 = vpop.permute.xlu1 %605 }
 0x354   : > { %v611_v11 = vsel %vm360_vm2, %v606_v10, 0 }
 0x355   : > { %620 = vmatpush.bf16.msra.mxu2 %v611_v11 }
 0x358   : > { %796 = vmatmul.msk.bf16.vlgmr.msra.gmra.mxu2 %vm317_vm1, %v604_v6 }
 0x3bb   : > { %v518_v15 = vpop.xlane.xlu2 %517 }
 0x3bc   : > { %898 = vrcp.f32 %v518_v15 }
 0x3bd   : > { %900 = vrcp.f32 %v602_v22 }
 0x3c2   : > { %v899_v17 = vpop.eup %898 }
 0x3c3   : > { %v901_v23 = vpop.eup %900 }
 0x3c6   : > { %v538_v18 = vpop.f32.mrf.mxu1 }
 0x3c7   : > { %v542_v19 = vmul.f32 %v899_v17, %v538_v18 }
 0x3c9   : > { %v543_v20 = vpack.c.bf16 %v542_v19, %v542_v19 }
 0x3cb   : > { %793 = vmatmul.msk.bf16.vlgmr.msra.gmra.mxu3 %vm317_vm1, %v543_v20 }
 0x3ce   : > { %v540_v21 = vpop.f32.mrf.mxu1 }
 0x3db   : > { %v622_v24 = vpop.f32.mrf.mxu2 }
 0x3dc   : > { %v626_v25 = vmul.f32 %v901_v23, %v622_v24 }
 0x3de   : > { %v627_v26 = vpack.c.bf16 %v626_v25, %v626_v25 }
 0x3e0   : > { %797 = vmatmul.msk.bf16.vlgmr.msra.gmra.mxu0 %vm317_vm1, %v627_v26 }
 0x3e3   : > { %v624_v27 = vpop.f32.mrf.mxu2 }
 0x44e   : > { %v561_v28 = vpop.f32.mrf.mxu3 }
 0x44f   : > { %v565_v30 = vadd.f32 %v561_v28, %v479_v3 }
 0x456   : > { %v563_v29 = vpop.f32.mrf.mxu3 }
 0x45d   : > { %v645_v32 = vpop.f32.mrf.mxu0 }
 0x45e   : > { %v649_v33 = vadd.f32 %v645_v32, %v565_v30 }
 0x460   : > { %v654_v34 = vadd.f32 %v885_v31, %v649_v33 }
 0x462   : > { %655 = vst.msk [vmem:[%s274_s11] sm:$0xff] %vm297_vm0, %v654_v34 }
 0x463   : > { %1019 = shalt.err (!%p1016_p9)
}
 0x464   : > { %814 = dma.vmem_to_hbm [thread:$0]  (%p1178_p4), %s670_s13, 128, %s672_s14, %s657_s25  }
 0x465   : > { %v647_v35 = vpop.f32.mrf.mxu0 }
 0x466 PF: > { %s683_s22 = sand.u32 1, %s1050_s18   ;;  %p1313_p10 = scmp.ge.s32.totalorder %s1062_s21, 2 }
 0x467   : > { %s684_s26 = scalar_lea.sflag [#allocation4], %s683_s22 }
 0x468   : > { %p828_p13 = pnand %p1313_p10, %p1182_p6 }
 0x46a   : > { %p829_p11 = pneg %p828_p13 }
 0x46c   : > { %1045 = dma.done.wait (%p829_p11), %s684_s26, 128  }
 0x46d   : > { %1047 = vsyncadd (%p829_p11), %s684_s26, 4294967168  ;;  %p19_p0 = scmp.ge.s32.totalorder %s1152_s12, 4   ;;  %s1314_s18 = smov %s1054_s19 }
 0x46e   : > { %s1315_s19 = smov %s1058_s20  ;;  %s1316_s20 = smov %s1163_s15 }
 0x46f   : > { %s1317_s21 = smov %s1152_s12  ;;  %21 = sbr.rel (!%p19_p0) target bundleno = 6 (0x6), region = 96 }
 0x474   :  { %690 = vsyncpa [#allocation3], 1 }
 0x475   :  { %692 = vsyncpa [#allocation3 + $0x1], 1 }
 0x476   :  { %693 = vsyncpa [#allocation6], 1 }
 0x477   :  { %694 = vsyncpa [#allocation4], 1 }
 0x478   :  { %696 = vsyncpa [#allocation4 + $0x1], 1 }

</bundles_post_ra>
